<compile_context>
chip_gen: v7x
topology: tpu7x:2x2x1
jax: 0.10.0
libtpu: 0.0.40
codegen_flags: <defaults>
</compile_context>

<pallas_src>
import math

import jax
import jax.numpy as jnp
from jax import lax
from jax.experimental import pallas as pl
from jax.experimental.pallas import tpu as pltpu

EPS = 1e-5
NEG_SLOPE = 0.1


def _net_kernel(x_ref, w1_ref, scale_ref, b1_ref, w2_ref, out_ref):
    # Cast x to bf16 in-kernel (streaming f32 from HBM is cheaper than a
    # wrapper-side cast, which would cost an extra full HBM pass).
    xb = x_ref[...].astype(jnp.bfloat16)                       # (tb, D)
    # h^T = W1 @ x^T, computed by contracting the last dims of both operands
    # (lhs (H, D), rhs (tb, D) -> (H, tb)); bf16 MXU with f32 accumulation.
    h = lax.dot_general(
        w1_ref[...], xb,
        dimension_numbers=(((1,), (1,)), ((), ())),
        preferred_element_type=jnp.float32)                    # (H, tb) f32
    # Eval-mode BatchNorm (+ linear bias) as an f32 per-feature affine.
    h = h * scale_ref[...] + b1_ref[...]                       # (H,1) bcast
    # LeakyReLU(negative_slope=0.1).
    h = jnp.where(h >= 0, h, NEG_SLOPE * h)
    # Output head (out_dim == 1): weighted reduce over the sublane (H) axis
    # -> mostly VPU vreg adds; result is a lane-dense (1, tb) row.
    out_ref[...] = jnp.sum(h * w2_ref[...], axis=0,
                           keepdims=True).astype(out_ref.dtype)


def _round_up(x, m):
    return (x + m - 1) // m * m


def _choose_tb(B, block_b):
    """Pick a batch tile: lane-dense (multiple of 128) when tiling, and at
    least 2 grid steps for larger batches (v7x megacore)."""
    if B <= 128:
        return B  # single tile; block dims equal full array dims
    half = _round_up(pl.cdiv(B, 2), 128)
    tb = min(block_b, half)
    return max(128, (tb // 128) * 128)


def net_forward(x, params, *, block_b=2048):
    """Eval-mode forward.  x: (B, input_dim) f32 -> (B, output_dim) f32."""
    w1, b1, gamma, beta, rmean, rvar, w2, b2 = params
    B, D = x.shape
    H = w1.shape[0]                     # w1 in PyTorch layout (H, D)
    out_dim = w2.shape[0]               # w2 in PyTorch layout (out_dim, H)
    assert out_dim == 1, "sublane-reduce output head assumes output_dim == 1"

    # --- Trace-time prep (tiny, weight-sized; no per-sample HBM passes) ---
    scale = gamma * lax.rsqrt(rvar + EPS)                       # (H,)
    w1_bf = w1.astype(jnp.bfloat16)                             # (H, D) bf16
    scale_col = scale.reshape(H, 1).astype(jnp.float32)         # (H, 1) f32
    b1f_col = ((b1 - rmean) * scale + beta).reshape(H, 1).astype(jnp.float32)
    w2_col = w2.reshape(H, out_dim).astype(jnp.float32)         # (H, 1) f32

    tb = _choose_tb(B, block_b)
    num_tiles = pl.cdiv(B, tb)

    out = pl.pallas_call(
        _net_kernel,
        out_shape=jax.ShapeDtypeStruct((1, B), jnp.float32),
        grid=(num_tiles,),
        in_specs=[
            pl.BlockSpec((tb, D), lambda i: (i, 0)),   # x: streamed f32 tiles
            pl.BlockSpec((H, D), lambda i: (0, 0)),    # W1 (bf16), resident
            pl.BlockSpec((H, 1), lambda i: (0, 0)),    # BN scale (f32)
            pl.BlockSpec((H, 1), lambda i: (0, 0)),    # folded bias (f32)
            pl.BlockSpec((H, 1), lambda i: (0, 0)),    # head weights (f32)
        ],
        out_specs=pl.BlockSpec((1, tb), lambda i: (0, i)),  # lane-dense rows
        compiler_params=pltpu.CompilerParams(
            dimension_semantics=("parallel",),
            vmem_limit_bytes=32 * 1024 * 1024,
        ),
    )(x, w1_bf, scale_col, b1f_col, w2_col)

    # Final bias added outside the kernel (tiny XLA add on a (B, 1) array).
    return out.reshape(B, out_dim) + b2.reshape(1, out_dim)


def init_params(key, input_dim, hidden_dim, output_dim):
    """Deterministic init matching Net._weight_init (kaiming_normal_, a=0.1).

    Weights are kept in PyTorch nn.Linear layout: w1 (H, D), w2 (out, H).
    """
    k1, k2 = jax.random.split(key)
    gain = math.sqrt(2.0 / (1.0 + NEG_SLOPE ** 2))

    std1 = gain / math.sqrt(input_dim)          # fan_in = input_dim
    w1 = jax.random.normal(k1, (hidden_dim, input_dim), jnp.float32) * std1
    b1 = jnp.zeros((hidden_dim,), jnp.float32)

    gamma = jnp.ones((hidden_dim,), jnp.float32)
    beta = jnp.zeros((hidden_dim,), jnp.float32)
    rmean = jnp.zeros((hidden_dim,), jnp.float32)
    rvar = jnp.ones((hidden_dim,), jnp.float32)

    std2 = gain / math.sqrt(hidden_dim)         # fan_in = hidden_dim
    w2 = jax.random.normal(k2, (output_dim, hidden_dim), jnp.float32) * std2
    b2 = jnp.zeros((output_dim,), jnp.float32)

    return (w1, b1, gamma, beta, rmean, rvar, w2, b2)


if __name__ == "__main__":
    key = jax.random.PRNGKey(0)
    k_x, k_p = jax.random.split(key)

    # block_b=128 with batch=300 forces a multi-step grid (grid=(3,)) whose
    # last block is partial (300 = 128 + 128 + 44), exercising the masked
    # OOB-read/-write path with no wrapper-side padding.
    batch, input_dim, hidden_dim, output_dim = 300, 32, 256, 1
    x = jax.random.normal(k_x, (batch, input_dim), jnp.float32)
    params = init_params(k_p, input_dim, hidden_dim, output_dim)

    out = net_forward(x, params, block_b=128)
    jax.block_until_ready(out)

    # Pure-JAX f32 reference (kernel uses bf16 MXU operands -> loose tolerance).
    w1, b1, gamma, beta, rmean, rvar, w2, b2 = params
    h = x @ w1.T + b1
    h = (h - rmean) / jnp.sqrt(rvar + EPS) * gamma + beta
    h = jnp.where(h >= 0, h, NEG_SLOPE * h)
    ref = h @ w2.T + b2

    assert out.shape == (batch, output_dim), out.shape
    assert jnp.allclose(out, ref, atol=5e-2, rtol=5e-2), (
        float(jnp.max(jnp.abs(out - ref))))

    print("KERNEL_OK")
</pallas_src>

<mosaic_0001>
module attributes {stable_mosaic.version = 11 : i64} {
  func.func @_net_kernel(%arg0: i32, %arg1: memref<128x32xf32, #tpu.memory_space<vmem>>, %arg2: memref<256x32xbf16, #tpu.memory_space<vmem>>, %arg3: memref<256x1xf32, #tpu.memory_space<vmem>>, %arg4: memref<256x1xf32, #tpu.memory_space<vmem>>, %arg5: memref<256x1xf32, #tpu.memory_space<vmem>>, %arg6: memref<1x128xf32, #tpu.memory_space<vmem>>) attributes {dimension_semantics = [#tpu.dimension_semantics<parallel>], iteration_bounds = array<i64: 3>, scalar_prefetch = 0 : i64, scratch_operands = 0 : i64, tpu.core_type = #tpu.core_type<tc>, window_params = [{transform_indices = @transform_0, window_bounds = array<i64: 128, 32>}, {pipeline_mode = #tpu.pipeline_mode<synchronous>, transform_indices = @transform_1, window_bounds = array<i64: 256, 32>}, {pipeline_mode = #tpu.pipeline_mode<synchronous>, transform_indices = @transform_2, window_bounds = array<i64: 256, 1>}, {pipeline_mode = #tpu.pipeline_mode<synchronous>, transform_indices = @transform_3, window_bounds = array<i64: 256, 1>}, {pipeline_mode = #tpu.pipeline_mode<synchronous>, transform_indices = @transform_4, window_bounds = array<i64: 256, 1>}, {transform_indices = @transform_5, window_bounds = array<i64: 1, 128>}]} {
    %c0 = arith.constant 0 : index
    %c0_0 = arith.constant 0 : index
    %0 = vector.load %arg1[%c0, %c0_0] : memref<128x32xf32, #tpu.memory_space<vmem>>, vector<128x32xf32>
    %1 = arith.truncf %0 : vector<128x32xf32> to vector<128x32xbf16>
    %c0_1 = arith.constant 0 : index
    %c0_2 = arith.constant 0 : index
    %2 = vector.load %arg2[%c0_1, %c0_2] : memref<256x32xbf16, #tpu.memory_space<vmem>>, vector<256x32xbf16>
    %cst = arith.constant dense<0.000000e+00> : vector<256x128xf32>
    %3 = tpu.matmul %2, %1, %cst {dimension_numbers = #tpu.dot_dimension_numbers<[1], [1], [0], [0], [0, 0, 1, 0], [], []>} : vector<256x32xbf16>, vector<128x32xbf16>, vector<256x128xf32> -> vector<256x128xf32>
    %c0_3 = arith.constant 0 : index
    %c0_4 = arith.constant 0 : index
    %4 = vector.load %arg3[%c0_3, %c0_4] : memref<256x1xf32, #tpu.memory_space<vmem>>, vector<256x1xf32>
    %5 = vector.broadcast %4 : vector<256x1xf32> to vector<256x128xf32>
    %6 = arith.mulf %3, %5 : vector<256x128xf32>
    %c0_5 = arith.constant 0 : index
    %c0_6 = arith.constant 0 : index
    %7 = vector.load %arg4[%c0_5, %c0_6] : memref<256x1xf32, #tpu.memory_space<vmem>>, vector<256x1xf32>
    %8 = vector.broadcast %7 : vector<256x1xf32> to vector<256x128xf32>
    %9 = arith.addf %6, %8 : vector<256x128xf32>
    %cst_7 = arith.constant 0.000000e+00 : f32
    %10 = vector.broadcast %cst_7 : f32 to vector<256x128xf32>
    %11 = arith.cmpf oge, %9, %10 : vector<256x128xf32>
    %cst_8 = arith.constant 1.000000e-01 : f32
    %12 = vector.broadcast %cst_8 : f32 to vector<256x128xf32>
    %13 = arith.mulf %12, %9 : vector<256x128xf32>
    %14 = arith.select %11, %9, %13 : vector<256x128xi1>, vector<256x128xf32>
    %c0_9 = arith.constant 0 : index
    %c0_10 = arith.constant 0 : index
    %15 = vector.load %arg5[%c0_9, %c0_10] : memref<256x1xf32, #tpu.memory_space<vmem>>, vector<256x1xf32>
    %16 = vector.broadcast %15 : vector<256x1xf32> to vector<256x128xf32>
    %17 = arith.mulf %14, %16 : vector<256x128xf32>
    %cst_11 = arith.constant dense<0.000000e+00> : vector<128xf32>
    %18 = vector.multi_reduction <add>, %17, %cst_11 [0] : vector<256x128xf32> to vector<128xf32>
    %19 = vector.shape_cast %18 : vector<128xf32> to vector<1x128xf32>
    %c0_12 = arith.constant 0 : index
    %c0_13 = arith.constant 0 : index
    %20 = vector.load %arg6[%c0_12, %c0_13] : memref<1x128xf32, #tpu.memory_space<vmem>>, vector<1x128xf32>
    tpu.vector_store %arg6[%c0_12, %c0_13], %19 {strides = array<i32>} : memref<1x128xf32, #tpu.memory_space<vmem>>, vector<1x128xf32>,
    return
  }
  func.func @transform_0(%arg0: i32) -> (i32, i32) {
    %c0_i32 = arith.constant 0 : i32
    %c0_i32_0 = arith.constant 0 : i32
    return %arg0, %c0_i32 : i32, i32
  }
  func.func @transform_1(%arg0: i32) -> (i32, i32) {
    %c0_i32 = arith.constant 0 : i32
    %c0_i32_0 = arith.constant 0 : i32
    %c0_i32_1 = arith.constant 0 : i32
    return %c0_i32, %c0_i32_0 : i32, i32
  }
  func.func @transform_2(%arg0: i32) -> (i32, i32) {
    %c0_i32 = arith.constant 0 : i32
    %c0_i32_0 = arith.constant 0 : i32
    %c0_i32_1 = arith.constant 0 : i32
    return %c0_i32, %c0_i32_0 : i32, i32
  }
  func.func @transform_3(%arg0: i32) -> (i32, i32) {
    %c0_i32 = arith.constant 0 : i32
    %c0_i32_0 = arith.constant 0 : i32
    %c0_i32_1 = arith.constant 0 : i32
    return %c0_i32, %c0_i32_0 : i32, i32
  }
  func.func @transform_4(%arg0: i32) -> (i32, i32) {
    %c0_i32 = arith.constant 0 : i32
    %c0_i32_0 = arith.constant 0 : i32
    %c0_i32_1 = arith.constant 0 : i32
    return %c0_i32, %c0_i32_0 : i32, i32
  }
  func.func @transform_5(%arg0: i32) -> (i32, i32) {
    %c0_i32 = arith.constant 0 : i32
    %c0_i32_0 = arith.constant 0 : i32
    return %c0_i32, %arg0 : i32, i32
  }
}

</mosaic_0001>

<bundles_post_ra>
// kernel: tpu_custom_call.1
= control target key start
LH: loop header
LB: loop body
LE: loop exit
PB: predicated region body
PF: predicated region fallthrough
CT: control target
= control target key end

     0   :  { %10 = vsyncpa [#allocation3], 0  ;;  %s2566_s0 = inlined_call_operand.vmem [shape: f32[300,32], index: 0, kind: input, shape index: {}]   ;;  %s2567_s1 = inlined_call_operand.vmem [shape: bf16[256,32], index: 1, kind: input, shape index: {}]   ;;  %s2568_s2 = inlined_call_operand.vmem [shape: f32[256,1], index: 2, kind: input, shape index: {}]   ;;  %s2569_s3 = inlined_call_operand.vmem [shape: f32[256,1], index: 3, kind: input, shape index: {}]   ;;  %s2570_s4 = inlined_call_operand.vmem [shape: f32[256,1], index: 4, kind: input, shape index: {}]   ;;  %s2571_s5 = inlined_call_operand.hbm [shape: f32[1,300], index: 5, kind: output, shape index: {}]  }
   0x1   :  { %12 = vsyncpa [#allocation3 + $0x1], 0  ;;  %s1788_s18 = smov 0   ;;  %s1790_s19 = smov 0  }
   0x2   :  { %s1792_s20 = smov 0   ;;  %s1794_s21 = smov 0  }
   0x3 LB: > { %s1488_s22 = sadd.s32 4294967295, %s1754_s21   ;;  %s1489_s23 = sadd.s32 4294967294, %s1754_s21   ;;  %s1754_s21 = sphi %s1794_s21, %s2643_s21   ;;  %s1750_s20 = sphi %s1792_s20, %s2642_s20   ;;  %s1746_s19 = sphi %s1790_s19, %s2641_s19   ;;  %s1742_s18 = sphi %s1788_s18, %s2640_s18  }
   0x4   : > { %s1811_s24 = sadd.s32 1, %s1754_s21   ;;  %s135_s25 = sadd.s32 1, %s1750_s20 }
   0x5   : > { %s132_s26 = ssub.s32 %s1754_s21, %s1811_s24  ;;  %p145_p0 = scmp.ne.s32.totalorder %s1750_s20, %s1746_s19 }
   0x6   : > { %p133_p1 = scmp.eq.s32.totalorder %s132_s26, 0  ;;  %p146_p2 = scmp.eq.s32.totalorder %s1488_s22, 2 }
   0x7   : > { %p151_p3 = scmp.ne.s32.totalorder %s1746_s19, %s1742_s18  ;;  %p152_p4 = scmp.eq.s32.totalorder %s1489_s23, 2 }
   0x8   : > { %s1821_s27 = scalar_select %p133_p1, %s1750_s20, %s135_s25  }
   0x9   : > { %p1823_p5 = por %p146_p2, %p145_p0  ;;  %p1827_p6 = por %p152_p4, %p151_p3 }
   0xa   : > { %p1492_p7 = scmp.ge.s32.totalorder %s1754_s21, 1  ;;  %p199_p8 = scmp.lt.s32.totalorder %s1754_s21, 4 }
   0xc   : > { %p200_p9 = pnand %p1492_p7, %p199_p8 }
   0xe   : > { %203 = sbr.rel (%p200_p9) target bundleno = 409 (0x199), region = 40 }
  0x15   : > { %v617_v0 = vld [vmem:[%s2568_s2 + $0x10] sm:$0xff]  ;;  %v615_v1 = vld [vmem:[%s2568_s2] sm:$0xff]  ;;  %s1839_s9 = sshll.u32 %s1488_s22, 4  ;;  %v1756_v2 = vmov 0   ;;  %v618_v3 = vld [vmem:[%s2568_s2 + $0x18] sm:$0xff]  ;;  %vm381_vm0 = vcmask 261120  }
  0x16   : > { %1675 = vset.pattern.permute.xlu1 %v1756_v2  ;;  %1674 = vset.pattern.permute.xlu0 %v1756_v2  ;;  %p235_p10 = scmp.lt.s32.totalorder %s1839_s9, 37  ;;  %v616_v4 = vld [vmem:[%s2568_s2 + $0x8] sm:$0xff]  ;;  %v619_v6 = vld [vmem:[%s2568_s2 + $0x20] sm:$0xff]  ;;  %v622_v14 = vld [vmem:[%s2568_s2 + $0x38] sm:$0xff]  ;;  %s2524_s22 = scalar_lea.hbm %s2571_s5, %s1839_s9 }
  0x17   : > { %659 = vperm.xlu1 %1675, %v617_v0   ;;  %649 = vperm.xlu0 %1674, %v615_v1   ;;  %v620_v5 = vld [vmem:[%s2568_s2 + $0x28] sm:$0xff]  ;;  %v621_v15 = vld [vmem:[%s2568_s2 + $0x30] sm:$0xff]  ;;  %v623_v19 = vld [vmem:[%s2568_s2 + $0x40] sm:$0xff]  ;;  %s1757_s26 = smov [#allocation2]  }
  0x18   : > { %s236_s14 = scalar_select %p235_p10, %s1839_s9, 37  ;;  %v624_v18 = vld [vmem:[%s2568_s2 + $0x48] sm:$0xff]  ;;  %v626_v22 = vld [vmem:[%s2568_s2 + $0x58] sm:$0xff]  ;;  %v625_v23 = vld [vmem:[%s2568_s2 + $0x50] sm:$0xff] }
  0x19   : > { %v1676_v24 = vld [vmem:[%s2567_s1] sm:$0xff]   ;;  %v628_v26 = vld [vmem:[%s2568_s2 + $0x68] sm:$0xff]  ;;  %v630_v32 = vld [vmem:[%s2568_s2 + $0x78] sm:$0xff]  ;;  %s1696_s6 = sshll.u32 %s1757_s26, 4  ;;  %s1697_s6 = int_to_ptr.vmem [resolvable:$false] %s1696_s6 }
  0x1a   : > { %s1494_s15 = sshll.u32 %s236_s14, 3  ;;  %v1677_v25 = vld [vmem:[%s2567_s1 + $0x40] sm:$0xff]   ;;  %1570 = vmatprep.mubr.msk.bf16.mxu0 %vm381_vm0, %v1676_v24  ;;  %v629_v33 = vld [vmem:[%s2568_s2 + $0x70] sm:$0xff]  ;;  %v632_v34 = vld [vmem:[%s2568_s2 + $0x88] sm:$0xff]  ;;  %s228_s14 = sand.u32 1, %s1746_s19  }
  0x1b   : > { %664 = vperm.xlu1 %1675, %v618_v3   ;;  %654 = vperm.xlu0 %1674, %v616_v4   ;;  %s1858_s30 = scalar_lea.vmem %s2566_s0, %s1494_s15  ;;  %v627_v29 = vld [vmem:[%s2568_s2 + $0x60] sm:$0xff]  ;;  %v634_v40 = vld [vmem:[%s2568_s2 + $0x98] sm:$0xff]  ;;  %v633_v41 = vld [vmem:[%s2568_s2 + $0x90] sm:$0xff]  ;;  %s229_s15 = scalar_lea.vmem [#allocation2], %s228_s14 }
  0x1c   : > { %v245_v7 = vld [vmem:[%s1858_s30] sm:$0xff]  ;;  %v246_v8 = vld [vmem:[%s1858_s30 + $0x8] sm:$0xff]  ;;  %v247_v9 = vld [vmem:[%s1858_s30 + $0x10] sm:$0xff]  ;;  %1586 = vmatprep.mubr.msk.bf16.mxu1 %vm381_vm0, %v1677_v25  ;;  %s1434_s16 = sshll.u32 %s229_s15, 4  ;;  %s1422_s23 = scalar_lea.sflag [#allocation3], %s228_s14  ;;  %s2526_s16 = int_to_ptr.vmem [resolvable:$true] %s1434_s16 }
  0x1d   : > { %v261_v10 = vpack.c.bf16 %v246_v8, %v245_v7  ;;  %v248_v11 = vld [vmem:[%s1858_s30 + $0x18] sm:$0xff]  ;;  %v249_v16 = vld [vmem:[%s1858_s30 + $0x20] sm:$0xff]  ;;  %v250_v17 = vld [vmem:[%s1858_s30 + $0x28] sm:$0xff]  ;;  %s1692_s25 = scalar_lea.vmem %s2526_s16, 16  ;;  %s1698_s7 = scalar_lea.vmem %s1697_s6, 32 }
  0x1e   : > { %v262_v12 = vpack.c.bf16 %v248_v11, %v247_v9  ;;  %v263_v21 = vpack.c.bf16 %v250_v17, %v249_v16  ;;  %v251_v27 = vld [vmem:[%s1858_s30 + $0x30] sm:$0xff]  ;;  %v252_v28 = vld [vmem:[%s1858_s30 + $0x38] sm:$0xff]  ;;  %v253_v35 = vld [vmem:[%s1858_s30 + $0x40] sm:$0xff]  ;;  %p1693_p11 = scmp.ne.s32.totalorder %s2526_s16, %s1692_s25  ;;  %p1699_p0 = scmp.lt.s32.totalorder %s2526_s16, %s1697_s6 }
  0x1f   : > { %674 = vperm.xlu1 %1675, %v620_v5   ;;  %669 = vperm.xlu0 %1674, %v619_v6   ;;  %v431_v13 = vsel %vm381_vm0, %v261_v10, 0  ;;  %v264_v31 = vpack.c.bf16 %v252_v28, %v251_v27  ;;  %v254_v36 = vld [vmem:[%s1858_s30 + $0x48] sm:$0xff]  ;;  %v631_v37 = vld [vmem:[%s2568_s2 + $0x80] sm:$0xff]  ;;  %v255_v42 = vld [vmem:[%s1858_s30 + $0x50] sm:$0xff]  ;;  %p1700_p1 = scmp.lt.s32.totalorder %s1698_s7, %s1692_s25 }
  0x20   : > { %1618 = vmatprep.subr.msk.bf16.mxu0 %vm381_vm0, %v261_v10  ;;  %1619 = vmatprep.subr.msk.bf16.mxu1 %vm381_vm0, %v261_v10  ;;  %v434_v20 = vsel %vm381_vm0, %v262_v12, 0  ;;  %v437_v30 = vsel %vm381_vm0, %v263_v21, 0  ;;  %v265_v39 = vpack.c.bf16 %v254_v36, %v253_v35  ;;  %v256_v43 = vld [vmem:[%s1858_s30 + $0x58] sm:$0xff]  ;;  %v636_v44 = vld [vmem:[%s2568_s2 + $0xa8] sm:$0xff]  ;;  %v635_v45 = vld [vmem:[%s2568_s2 + $0xa0] sm:$0xff]  ;;  %p1694_p12 = pnand %p1693_p11, %p1823_p5 }
  0x21   : > { %1555 = vmatpush3.bf16.xpose.msra.mxu0 %v431_v13  ;;  %1610 = vmatpush3.bf16.xpose.msra.mxu1 %v431_v13  ;;  %v440_v38 = vsel %vm381_vm0, %v264_v31, 0  ;;  %v266_v47 = vpack.c.bf16 %v256_v43, %v255_v42  ;;  %v638_v48 = vld [vmem:[%s2568_s2 + $0xb8] sm:$0xff]  ;;  %v637_v49 = vld [vmem:[%s2568_s2 + $0xb0] sm:$0xff]  ;;  %v257_v50 = vld [vmem:[%s1858_s30 + $0x60] sm:$0xff]  ;;  %p1701_p2 = por %p1700_p1, %p1699_p0 }
  0x22   : > { %1620 = vmatprep.subr.msk.bf16.mxu0 %vm381_vm0, %v262_v12  ;;  %1621 = vmatprep.subr.msk.bf16.mxu1 %vm381_vm0, %v262_v12  ;;  %v443_v46 = vsel %vm381_vm0, %v265_v39, 0  ;;  %v258_v51 = vld [vmem:[%s1858_s30 + $0x68] sm:$0xff]  ;;  %v639_v53 = vld [vmem:[%s2568_s2 + $0xc0] sm:$0xff]  ;;  %v642_v56 = vld [vmem:[%s2568_s2 + $0xd8] sm:$0xff]  ;;  %p1695_p13 = pneg %p1694_p12 }
  0x23   : > { %684 = vperm.xlu1 %1675, %v622_v14   ;;  %679 = vperm.xlu0 %1674, %v621_v15   ;;  %v640_v52 = vld [vmem:[%s2568_s2 + $0xc8] sm:$0xff]  ;;  %v446_v54 = vsel %vm381_vm0, %v266_v47, 0  ;;  %v267_v55 = vpack.c.bf16 %v258_v51, %v257_v50  ;;  %v641_v57 = vld [vmem:[%s2568_s2 + $0xd0] sm:$0xff]  ;;  %v260_v59 = vld [vmem:[%s1858_s30 + $0x78] sm:$0xff] }
  0x24   : > { %v259_v58 = vld [vmem:[%s1858_s30 + $0x70] sm:$0xff]  ;;  %v644_v60 = vld [vmem:[%s2568_s2 + $0xe8] sm:$0xff]  ;;  %v643_v61 = vld [vmem:[%s2568_s2 + $0xe0] sm:$0xff]  ;;  %p1702_p3 = pnand %p1701_p2, %p1695_p13 }
  0x25   : > { %v449_v62 = vsel %vm381_vm0, %v267_v55, 0  ;;  %v268_v63 = vpack.c.bf16 %v260_v59, %v259_v58  ;;  %v646_v0 = vld [vmem:[%s2568_s2 + $0xf8] sm:$0xff]  ;;  %v645_v1 = vld [vmem:[%s2568_s2 + $0xf0] sm:$0xff]  ;;  %v840_v2 = vld [vmem:[%s2569_s3 + $0x8] sm:$0xff] }
  0x26   : > { %v839_v3 = vld [vmem:[%s2569_s3] sm:$0xff]  ;;  %v842_v5 = vld [vmem:[%s2569_s3 + $0x18] sm:$0xff]  ;;  %v841_v6 = vld [vmem:[%s2569_s3 + $0x10] sm:$0xff] }
  0x27   : > { %694 = vperm.xlu1 %1675, %v624_v18   ;;  %689 = vperm.xlu0 %1674, %v623_v19   ;;  %v452_v4 = vsel %vm381_vm0, %v268_v63, 0  ;;  %v844_v7 = vld [vmem:[%s2569_s3 + $0x28] sm:$0xff]  ;;  %v843_v8 = vld [vmem:[%s2569_s3 + $0x20] sm:$0xff]  ;;  %v1680_v11 = vld [vmem:[%s2567_s1 + $0x10] sm:$0xff]  }
  0x28   : > { %v1678_v9 = vld [vmem:[%s2567_s1 + $0x8] sm:$0xff]   ;;  %v1681_v12 = vld [vmem:[%s2567_s1 + $0x50] sm:$0xff]   ;;  %v846_v13 = vld [vmem:[%s2569_s3 + $0x38] sm:$0xff] }
  0x29   : > { %1557 = vmatpush3.bf16.xpose.msra.mxu0 %v434_v20  ;;  %1611 = vmatpush3.bf16.xpose.msra.mxu1 %v434_v20  ;;  %v1679_v10 = vld [vmem:[%s2567_s1 + $0x48] sm:$0xff]   ;;  %v845_v14 = vld [vmem:[%s2569_s3 + $0x30] sm:$0xff]  ;;  %v847_v16 = vld [vmem:[%s2569_s3 + $0x40] sm:$0xff] }
  0x2a   : > { %1622 = vmatprep.subr.msk.bf16.mxu0 %vm381_vm0, %v263_v21  ;;  %1623 = vmatprep.subr.msk.bf16.mxu1 %vm381_vm0, %v263_v21  ;;  %v848_v15 = vld [vmem:[%s2569_s3 + $0x48] sm:$0xff]  ;;  %v1682_v17 = vld [vmem:[%s2567_s1 + $0x18] sm:$0xff]   ;;  %v1684_v19 = vld [vmem:[%s2567_s1 + $0x20] sm:$0xff]  }
  0x2b   : > { %704 = vperm.xlu1 %1675, %v626_v22   ;;  %699 = vperm.xlu0 %1674, %v625_v23   ;;  %v1683_v18 = vld [vmem:[%s2567_s1 + $0x58] sm:$0xff]   ;;  %v1685_v20 = vld [vmem:[%s2567_s1 + $0x60] sm:$0xff]   ;;  %v849_v22 = vld [vmem:[%s2569_s3 + $0x50] sm:$0xff] }
  0x2c   : > { %v850_v21 = vld [vmem:[%s2569_s3 + $0x58] sm:$0xff]  ;;  %v852_v23 = vld [vmem:[%s2569_s3 + $0x68] sm:$0xff]  ;;  %v851_v24 = vld [vmem:[%s2569_s3 + $0x60] sm:$0xff] }
  0x2d   : > { %v1686_v25 = vld [vmem:[%s2567_s1 + $0x28] sm:$0xff]   ;;  %v1688_v27 = vld [vmem:[%s2567_s1 + $0x30] sm:$0xff]   ;;  %v858_v35 = vld [vmem:[%s2569_s3 + $0x98] sm:$0xff] }
  0x2e   : > { %v1689_v28 = vld [vmem:[%s2567_s1 + $0x70] sm:$0xff]   ;;  %v863_v42 = vld [vmem:[%s2569_s3 + $0xc0] sm:$0xff]  ;;  %v866_v43 = vld [vmem:[%s2569_s3 + $0xd8] sm:$0xff] }
  0x2f   : > { %714 = vperm.xlu1 %1675, %v628_v26   ;;  %709 = vperm.xlu0 %1674, %v627_v29   ;;  %v1687_v26 = vld [vmem:[%s2567_s1 + $0x68] sm:$0xff]   ;;  %v854_v29 = vld [vmem:[%s2569_s3 + $0x78] sm:$0xff]  ;;  %v857_v36 = vld [vmem:[%s2569_s3 + $0x90] sm:$0xff] }
  0x30   : > { %v1162_v50 = vld [vmem:[%s2570_s4 + $0x18] sm:$0xff] }
  0x31   : > { %1559 = vmatpush3.bf16.xpose.msra.mxu0 %v437_v30  ;;  %1612 = vmatpush3.bf16.xpose.msra.mxu1 %v437_v30  ;;  %v853_v30 = vld [vmem:[%s2569_s3 + $0x70] sm:$0xff]  ;;  %v1166_v58 = vld [vmem:[%s2570_s4 + $0x38] sm:$0xff] }
  0x32   : > { %1624 = vmatprep.subr.msk.bf16.mxu0 %vm381_vm0, %v264_v31  ;;  %1625 = vmatprep.subr.msk.bf16.mxu1 %vm381_vm0, %v264_v31  ;;  %v856_v31 = vld [vmem:[%s2569_s3 + $0x88] sm:$0xff] }
  0x33   : > { %724 = vperm.xlu1 %1675, %v630_v32   ;;  %719 = vperm.xlu0 %1674, %v629_v33   ;;  %v855_v32 = vld [vmem:[%s2569_s3 + $0x80] sm:$0xff]  ;;  %v1690_v33 = vld [vmem:[%s2567_s1 + $0x38] sm:$0xff]  }
  0x37   : > { %734 = vperm.xlu1 %1675, %v632_v34   ;;  %729 = vperm.xlu0 %1674, %v631_v37   ;;  %v1691_v34 = vld [vmem:[%s2567_s1 + $0x78] sm:$0xff]   ;;  %v860_v37 = vld [vmem:[%s2569_s3 + $0xa8] sm:$0xff] }
  0x39   : > { %1561 = vmatpush3.bf16.xpose.msra.mxu0 %v440_v38  ;;  %1613 = vmatpush3.bf16.xpose.msra.mxu1 %v440_v38  ;;  %v859_v38 = vld [vmem:[%s2569_s3 + $0xa0] sm:$0xff] }
  0x3a   : > { %1626 = vmatprep.subr.msk.bf16.mxu0 %vm381_vm0, %v265_v39  ;;  %1627 = vmatprep.subr.msk.bf16.mxu1 %vm381_vm0, %v265_v39  ;;  %v862_v39 = vld [vmem:[%s2569_s3 + $0xb8] sm:$0xff] }
  0x3b   : > { %744 = vperm.xlu1 %1675, %v634_v40   ;;  %739 = vperm.xlu0 %1674, %v633_v41   ;;  %v861_v40 = vld [vmem:[%s2569_s3 + $0xb0] sm:$0xff]  ;;  %v864_v41 = vld [vmem:[%s2569_s3 + $0xc8] sm:$0xff] }
  0x3f   : > { %754 = vperm.xlu1 %1675, %v636_v44   ;;  %749 = vperm.xlu0 %1674, %v635_v45   ;;  %v865_v44 = vld [vmem:[%s2569_s3 + $0xd0] sm:$0xff]  ;;  %v1159_v45 = vld [vmem:[%s2570_s4] sm:$0xff] }
  0x41   : > { %1563 = vmatpush3.bf16.xpose.msra.mxu0 %v443_v46  ;;  %1614 = vmatpush3.bf16.xpose.msra.mxu1 %v443_v46  ;;  %v867_v46 = vld [vmem:[%s2569_s3 + $0xe0] sm:$0xff] }
  0x42   : > { %1628 = vmatprep.subr.msk.bf16.mxu0 %vm381_vm0, %v266_v47  ;;  %1629 = vmatprep.subr.msk.bf16.mxu1 %vm381_vm0, %v266_v47  ;;  %v1161_v47 = vld [vmem:[%s2570_s4 + $0x10] sm:$0xff] }
  0x43   : > { %764 = vperm.xlu1 %1675, %v638_v48   ;;  %759 = vperm.xlu0 %1674, %v637_v49   ;;  %v1160_v48 = vld [vmem:[%s2570_s4 + $0x8] sm:$0xff]  ;;  %v1163_v49 = vld [vmem:[%s2570_s4 + $0x20] sm:$0xff] }
  0x47   : > { %774 = vperm.xlu1 %1675, %v640_v52   ;;  %769 = vperm.xlu0 %1674, %v639_v53   ;;  %v1165_v53 = vld [vmem:[%s2570_s4 + $0x30] sm:$0xff] }
  0x49   : > { %1565 = vmatpush3.bf16.xpose.msra.mxu0 %v446_v54  ;;  %1615 = vmatpush3.bf16.xpose.msra.mxu1 %v446_v54  ;;  %v1164_v54 = vld [vmem:[%s2570_s4 + $0x28] sm:$0xff] }
  0x4a   : > { %1630 = vmatprep.subr.msk.bf16.mxu0 %vm381_vm0, %v267_v55  ;;  %1631 = vmatprep.subr.msk.bf16.mxu1 %vm381_vm0, %v267_v55 }
  0x4b   : > { %784 = vperm.xlu1 %1675, %v642_v56   ;;  %779 = vperm.xlu0 %1674, %v641_v57   ;;  %v1167_v57 = vld [vmem:[%s2570_s4 + $0x40] sm:$0xff] }
  0x4f   : > { %794 = vperm.xlu1 %1675, %v644_v60   ;;  %789 = vperm.xlu0 %1674, %v643_v61   ;;  %v1169_v61 = vld [vmem:[%s2570_s4 + $0x50] sm:$0xff] }
  0x51   : > { %1567 = vmatpush3.bf16.xpose.msra.mxu0 %v449_v62  ;;  %1616 = vmatpush3.bf16.xpose.msra.mxu1 %v449_v62  ;;  %v1168_v62 = vld [vmem:[%s2570_s4 + $0x48] sm:$0xff] }
  0x52   : > { %1632 = vmatprep.subr.msk.bf16.mxu0 %vm381_vm0, %v268_v63  ;;  %1633 = vmatprep.subr.msk.bf16.mxu1 %vm381_vm0, %v268_v63 }
  0x53   : > { %804 = vperm.xlu1 %1675, %v646_v0   ;;  %799 = vperm.xlu0 %1674, %v645_v1   ;;  %v1171_v1 = vld [vmem:[%s2570_s4 + $0x60] sm:$0xff] }
  0x57   : > { %878 = vperm.xlu1 %1675, %v840_v2   ;;  %873 = vperm.xlu0 %1674, %v839_v3   ;;  %v1170_v2 = vld [vmem:[%s2570_s4 + $0x58] sm:$0xff] }
  0x59   : > { %1569 = vmatpush3.bf16.xpose.msra.mxu0 %v452_v4  ;;  %1617 = vmatpush3.bf16.xpose.msra.mxu1 %v452_v4 }
  0x5b   : > { %888 = vperm.xlu1 %1675, %v842_v5   ;;  %883 = vperm.xlu0 %1674, %v841_v6   ;;  %v1173_v5 = vld [vmem:[%s2570_s4 + $0x70] sm:$0xff]  ;;  %v1172_v6 = vld [vmem:[%s2570_s4 + $0x68] sm:$0xff] }
  0x5f   : > { %898 = vperm.xlu1 %1675, %v844_v7   ;;  %893 = vperm.xlu0 %1674, %v843_v8  }
  0x60   : > { %1571 = vmatmul.mubr.msk.bf16.vlgmr.msra.gmra.mrb[0].mxu0 %vm381_vm0, %v1678_v9  ;;  %1587 = vmatmul.mubr.msk.bf16.vlgmr.msra.gmra.mrb[0].mxu1 %vm381_vm0, %v1679_v10  ;;  %v1175_v9 = vld [vmem:[%s2570_s4 + $0x80] sm:$0xff]  ;;  %v1174_v10 = vld [vmem:[%s2570_s4 + $0x78] sm:$0xff] }
  0x61   : > { %1574 = vmatprep.mubr.msk.bf16.mxu0 %vm381_vm0, %v1680_v11  ;;  %1590 = vmatprep.mubr.msk.bf16.mxu1 %vm381_vm0, %v1681_v12 }
  0x63   : > { %908 = vperm.xlu1 %1675, %v846_v13   ;;  %903 = vperm.xlu0 %1674, %v845_v14   ;;  %v1177_v13 = vld [vmem:[%s2570_s4 + $0x90] sm:$0xff]  ;;  %v1176_v14 = vld [vmem:[%s2570_s4 + $0x88] sm:$0xff] }
  0x67   : > { %918 = vperm.xlu1 %1675, %v848_v15   ;;  %913 = vperm.xlu0 %1674, %v847_v16  }
  0x68   : > { %1575 = vmatmul.mubr.msk.bf16.gmra.mrb[4].mxu0 %vm381_vm0, %v1682_v17  ;;  %1591 = vmatmul.mubr.msk.bf16.gmra.mrb[4].mxu1 %vm381_vm0, %v1683_v18  ;;  %v1179_v17 = vld [vmem:[%s2570_s4 + $0xa0] sm:$0xff]  ;;  %v1178_v18 = vld [vmem:[%s2570_s4 + $0x98] sm:$0xff] }
  0x69   : > { %1578 = vmatprep.mubr.msk.bf16.mxu0 %vm381_vm0, %v1684_v19  ;;  %1594 = vmatprep.mubr.msk.bf16.mxu1 %vm381_vm0, %v1685_v20 }
  0x6b   : > { %928 = vperm.xlu1 %1675, %v850_v21   ;;  %923 = vperm.xlu0 %1674, %v849_v22   ;;  %v1181_v21 = vld [vmem:[%s2570_s4 + $0xb0] sm:$0xff]  ;;  %v1180_v22 = vld [vmem:[%s2570_s4 + $0xa8] sm:$0xff] }
  0x6f   : > { %938 = vperm.xlu1 %1675, %v852_v23   ;;  %933 = vperm.xlu0 %1674, %v851_v24  }
  0x70   : > { %1579 = vmatmul.mubr.msk.bf16.gmra.mrb[8].mxu0 %vm381_vm0, %v1686_v25  ;;  %1595 = vmatmul.mubr.msk.bf16.gmra.mrb[8].mxu1 %vm381_vm0, %v1687_v26  ;;  %v1183_v25 = vld [vmem:[%s2570_s4 + $0xc0] sm:$0xff]  ;;  %v1182_v26 = vld [vmem:[%s2570_s4 + $0xb8] sm:$0xff] }
  0x71   : > { %1582 = vmatprep.mubr.msk.bf16.mxu0 %vm381_vm0, %v1688_v27  ;;  %1598 = vmatprep.mubr.msk.bf16.mxu1 %vm381_vm0, %v1689_v28 }
  0x73   : > { %948 = vperm.xlu1 %1675, %v854_v29   ;;  %943 = vperm.xlu0 %1674, %v853_v30   ;;  %v1185_v29 = vld [vmem:[%s2570_s4 + $0xd0] sm:$0xff]  ;;  %v1184_v30 = vld [vmem:[%s2570_s4 + $0xc8] sm:$0xff] }
  0x77   : > { %958 = vperm.xlu1 %1675, %v856_v31   ;;  %953 = vperm.xlu0 %1674, %v855_v32  }
  0x78   : > { %1583 = vmatmul.mubr.msk.bf16.gmra.mrb[12].mxu0 %vm381_vm0, %v1690_v33  ;;  %1599 = vmatmul.mubr.msk.bf16.gmra.mrb[12].mxu1 %vm381_vm0, %v1691_v34  ;;  %v1186_v33 = vld [vmem:[%s2570_s4 + $0xd8] sm:$0xff]  ;;  %v868_v34 = vld [vmem:[%s2569_s3 + $0xe8] sm:$0xff] }
  0x7b   : > { %968 = vperm.xlu1 %1675, %v858_v35   ;;  %963 = vperm.xlu0 %1674, %v857_v36  }
  0x7f   : > { %978 = vperm.xlu1 %1675, %v860_v37   ;;  %973 = vperm.xlu0 %1674, %v859_v38   ;;  %v1187_v37 = vld [vmem:[%s2570_s4 + $0xe0] sm:$0xff]  ;;  %v869_v38 = vld [vmem:[%s2569_s3 + $0xf0] sm:$0xff] }
  0x83   : > { %988 = vperm.xlu1 %1675, %v862_v39   ;;  %983 = vperm.xlu0 %1674, %v861_v40  }
  0x87   : > { %998 = vperm.xlu1 %1675, %v864_v41   ;;  %993 = vperm.xlu0 %1674, %v863_v42   ;;  %v1188_v41 = vld [vmem:[%s2570_s4 + $0xe8] sm:$0xff]  ;;  %v870_v42 = vld [vmem:[%s2569_s3 + $0xf8] sm:$0xff] }
  0x8b   : > { %1008 = vperm.xlu1 %1675, %v866_v43   ;;  %1003 = vperm.xlu0 %1674, %v865_v44  }
  0x8f   : > { %1193 = vperm.xlu1 %1675, %v1159_v45   ;;  %1013 = vperm.xlu0 %1674, %v867_v46   ;;  %v1190_v45 = vld [vmem:[%s2570_s4 + $0xf8] sm:$0xff]  ;;  %v1189_v46 = vld [vmem:[%s2570_s4 + $0xf0] sm:$0xff] }
  0x93   : > { %1203 = vperm.xlu1 %1675, %v1161_v47   ;;  %1198 = vperm.xlu0 %1674, %v1160_v48  }
  0x96   : > { %v2144_v51 = vpop.permute.xlu1 %659  ;;  %v2146_v52 = vpop.permute.xlu0 %649 }
  0x97   : > { %1213 = vperm.xlu1 %1675, %v1163_v49   ;;  %1208 = vperm.xlu0 %1674, %v1162_v50  }
  0x9a   : > { %v2154_v55 = vpop.permute.xlu1 %664  ;;  %v2156_v56 = vpop.permute.xlu0 %654 }
  0x9b   : > { %1223 = vperm.xlu1 %1675, %v1165_v53   ;;  %1218 = vperm.xlu0 %1674, %v1164_v54  }
  0x9e   : > { %v2164_v59 = vpop.permute.xlu1 %674  ;;  %v2166_v60 = vpop.permute.xlu0 %669 }
  0x9f   : > { %1233 = vperm.xlu1 %1675, %v1167_v57   ;;  %1228 = vperm.xlu0 %1674, %v1166_v58  }
  0xa2   : > { %v2174_v63 = vpop.permute.xlu1 %684  ;;  %v2176_v0 = vpop.permute.xlu0 %679 }
  0xa3   : > { %1243 = vperm.xlu1 %1675, %v1169_v61   ;;  %1238 = vperm.xlu0 %1674, %v1168_v62  }
  0xa6   : > { %v2184_v3 = vpop.permute.xlu1 %694  ;;  %v2186_v4 = vpop.permute.xlu0 %689 }
  0xa7   : > { %1253 = vperm.xlu1 %1675, %v1171_v1   ;;  %1248 = vperm.xlu0 %1674, %v1170_v2  }
  0xaa   : > { %v2194_v7 = vpop.permute.xlu1 %704  ;;  %v2196_v8 = vpop.permute.xlu0 %699 }
  0xab   : > { %1263 = vperm.xlu1 %1675, %v1173_v5   ;;  %1258 = vperm.xlu0 %1674, %v1172_v6  }
  0xae   : > { %v2204_v11 = vpop.permute.xlu1 %714  ;;  %v2206_v12 = vpop.permute.xlu0 %709 }
  0xaf   : > { %1273 = vperm.xlu1 %1675, %v1175_v9   ;;  %1268 = vperm.xlu0 %1674, %v1174_v10  }
  0xb2   : > { %v2214_v15 = vpop.permute.xlu1 %724  ;;  %v2216_v16 = vpop.permute.xlu0 %719 }
  0xb3   : > { %1283 = vperm.xlu1 %1675, %v1177_v13   ;;  %1278 = vperm.xlu0 %1674, %v1176_v14  }
  0xb6   : > { %v2224_v19 = vpop.permute.xlu1 %734  ;;  %v2226_v20 = vpop.permute.xlu0 %729 }
  0xb7   : > { %1293 = vperm.xlu1 %1675, %v1179_v17   ;;  %1288 = vperm.xlu0 %1674, %v1178_v18  }
  0xba   : > { %v2234_v23 = vpop.permute.xlu1 %744  ;;  %v2236_v24 = vpop.permute.xlu0 %739 }
  0xbb   : > { %2574 = vst [vmem:[#allocation5_spill] sm:$0xff] %v2234_v23  ;;  %1303 = vperm.xlu1 %1675, %v1181_v21   ;;  %1298 = vperm.xlu0 %1674, %v1180_v22  }
  0xbe   : > { %v2244_v27 = vpop.permute.xlu1 %754  ;;  %v2246_v28 = vpop.permute.xlu0 %749 }
  0xbf   : > { %2575 = vst [vmem:[#allocation6_spill] sm:$0xff] %v2244_v27  ;;  %2576 = vst [vmem:[#allocation7_spill] sm:$0xff] %v2246_v28  ;;  %1313 = vperm.xlu1 %1675, %v1183_v25   ;;  %1308 = vperm.xlu0 %1674, %v1182_v26  }
  0xc2   : > { %v2254_v31 = vpop.permute.xlu1 %764  ;;  %v2256_v32 = vpop.permute.xlu0 %759 }
  0xc3   : > { %2577 = vst [vmem:[#allocation8_spill] sm:$0xff] %v2254_v31  ;;  %2578 = vst [vmem:[#allocation9_spill] sm:$0xff] %v2256_v32  ;;  %1323 = vperm.xlu1 %1675, %v1185_v29   ;;  %1318 = vperm.xlu0 %1674, %v1184_v30  }
  0xc6   : > { %v2264_v35 = vpop.permute.xlu1 %774  ;;  %v2266_v36 = vpop.permute.xlu0 %769 }
  0xc7   : > { %2579 = vst [vmem:[#allocation10_spill] sm:$0xff] %v2264_v35  ;;  %2580 = vst [vmem:[#allocation11_spill] sm:$0xff] %v2266_v36  ;;  %1328 = vperm.xlu1 %1675, %v1186_v33   ;;  %1018 = vperm.xlu0 %1674, %v868_v34  }
  0xca   : > { %v2274_v39 = vpop.permute.xlu1 %784  ;;  %v2276_v40 = vpop.permute.xlu0 %779 }
  0xcb   : > { %2581 = vst [vmem:[#allocation12_spill] sm:$0xff] %v2274_v39  ;;  %2582 = vst [vmem:[#allocation13_spill] sm:$0xff] %v2276_v40  ;;  %1333 = vperm.xlu1 %1675, %v1187_v37   ;;  %1023 = vperm.xlu0 %1674, %v869_v38  }
  0xce   : > { %v2284_v43 = vpop.permute.xlu1 %794  ;;  %v2286_v44 = vpop.permute.xlu0 %789 }
  0xcf   : > { %2583 = vst [vmem:[#allocation14_spill] sm:$0xff] %v2284_v43  ;;  %2584 = vst [vmem:[#allocation15_spill] sm:$0xff] %v2286_v44  ;;  %1338 = vperm.xlu1 %1675, %v1188_v41   ;;  %1028 = vperm.xlu0 %1674, %v870_v42  }
  0xd2   : > { %v2294_v47 = vpop.permute.xlu1 %804  ;;  %v2296_v48 = vpop.permute.xlu0 %799 }
  0xd3   : > { %2585 = vst [vmem:[#allocation16_spill] sm:$0xff] %v2294_v47  ;;  %2586 = vst [vmem:[#allocation17_spill] sm:$0xff] %v2296_v48  ;;  %1348 = vperm.xlu1 %1675, %v1190_v45   ;;  %1343 = vperm.xlu0 %1674, %v1189_v46  }
  0xd6   : > { %v879_v49 = vpop.permute.xlu1 %878  ;;  %v874_v50 = vpop.permute.xlu0 %873 }
  0xda   : > { %v889_v53 = vpop.permute.xlu1 %888  ;;  %v884_v54 = vpop.permute.xlu0 %883 }
  0xde   : > { %v2298_v57 = vpop.permute.xlu1 %898  ;;  %v2300_v58 = vpop.permute.xlu0 %893 }
  0xe2   : > { %v2302_v61 = vpop.permute.xlu1 %908  ;;  %v2304_v62 = vpop.permute.xlu0 %903 }
  0xe6   : > { %v2306_v1 = vpop.permute.xlu1 %918  ;;  %v2308_v2 = vpop.permute.xlu0 %913 }
  0xea   : > { %v2310_v5 = vpop.permute.xlu1 %928  ;;  %v2312_v6 = vpop.permute.xlu0 %923 }
  0xee   : > { %v2314_v9 = vpop.permute.xlu1 %938  ;;  %v2316_v10 = vpop.permute.xlu0 %933 }
  0xef   : > { %2587 = vst [vmem:[#allocation18_spill] sm:$0xff] %v2314_v9 }
  0xf2   : > { %v2318_v13 = vpop.permute.xlu1 %948  ;;  %v2320_v14 = vpop.permute.xlu0 %943 }
  0xf6   : > { %v2322_v17 = vpop.permute.xlu1 %958  ;;  %v2324_v18 = vpop.permute.xlu0 %953 }
  0xf7   : > { %2588 = vst [vmem:[#allocation19_spill] sm:$0xff] %v2322_v17  ;;  %2589 = vst [vmem:[#allocation20_spill] sm:$0xff] %v2324_v18 }
  0xfa   : > { %v2326_v21 = vpop.permute.xlu0 %963  ;;  %v2328_v22 = vpop.permute.xlu1 %968 }
  0xfb   : > { %2590 = vst [vmem:[#allocation21_spill] sm:$0xff] %v2326_v21  ;;  %2591 = vst [vmem:[#allocation22_spill] sm:$0xff] %v2328_v22 }
  0xfe   : > { %v2330_v25 = vpop.permute.xlu0 %973  ;;  %v2332_v26 = vpop.permute.xlu1 %978 }
  0xff   : > { %2592 = vst [vmem:[#allocation23_spill] sm:$0xff] %v2330_v25  ;;  %2593 = vst [vmem:[#allocation24_spill] sm:$0xff] %v2332_v26 }
 0x102   : > { %v2334_v29 = vpop.permute.xlu0 %983  ;;  %v2336_v30 = vpop.permute.xlu1 %988 }
 0x103   : > { %2594 = vst [vmem:[#allocation25_spill] sm:$0xff] %v2334_v29  ;;  %2595 = vst [vmem:[#allocation26_spill] sm:$0xff] %v2336_v30 }
 0x106   : > { %v2338_v33 = vpop.permute.xlu0 %993  ;;  %v2340_v34 = vpop.permute.xlu1 %998 }
 0x107   : > { %2596 = vst [vmem:[#allocation27_spill] sm:$0xff] %v2338_v33  ;;  %2597 = vst [vmem:[#allocation28_spill] sm:$0xff] %v2340_v34 }
 0x10a   : > { %v2342_v37 = vpop.permute.xlu0 %1003  ;;  %v2344_v38 = vpop.permute.xlu1 %1008 }
 0x10b   : > { %2598 = vst [vmem:[#allocation29_spill] sm:$0xff] %v2342_v37  ;;  %2599 = vst [vmem:[#allocation30_spill] sm:$0xff] %v2344_v38 }
 0x10e   : > { %v2346_v41 = vpop.permute.xlu0 %1013  ;;  %v1194_v42 = vpop.permute.xlu1 %1193 }
 0x10f   : > { %2600 = vst [vmem:[#allocation31_spill] sm:$0xff] %v2346_v41 }
 0x112   : > { %v1199_v45 = vpop.permute.xlu0 %1198  ;;  %v1204_v46 = vpop.permute.xlu1 %1203 }
 0x116   : > { %v1209_v47 = vpop.permute.xlu0 %1208  ;;  %v2348_v48 = vpop.permute.xlu1 %1213 }
 0x11a   : > { %v2350_v43 = vpop.permute.xlu0 %1218  ;;  %v2352_v44 = vpop.permute.xlu1 %1223 }
 0x11e   : > { %v2354_v39 = vpop.permute.xlu0 %1228  ;;  %v2356_v33 = vpop.permute.xlu1 %1233 }
 0x122   : > { %v2358_v34 = vpop.permute.xlu0 %1238  ;;  %v2372_v21 = vpop.permute.xlu1 %1243 }
 0x126   : > { %v2374_v17 = vpop.permute.xlu0 %1248 }
 0x133   : > { %v1572_v37 = vpop.f32.mrb[0].mxu0  ;;  %v2360_v38 = vpop.f32.mrb[0].mxu1 }
 0x134   : > { %2601 = vst [vmem:[#allocation32_spill] sm:$0xff] %v2360_v38  ;;  %v488_v41 = vpop.f32.mrb[1].mxu0  ;;  %v2362_v40 = vpop.f32.mrb[1].mxu1  ;;  %v809_v35 = vmul.f32 %v1572_v37, %v2144_v51 }
 0x135   : > { %v807_v30 = vmul.f32 %v2146_v52, %v488_v41  ;;  %v1573_v36 = vpop.f32.mrb[2].mxu0  ;;  %v2366_v29 = vpop.f32.mrb[2].mxu1 }
 0x136   : > { %2602 = vst [vmem:[#allocation33_spill] sm:$0xff] %v2366_v29  ;;  %v810_v26 = vmul.f32 %v1573_v36, %v2154_v55  ;;  %v491_v31 = vpop.f32.mrb[3].mxu0  ;;  %v2369_v25 = vpop.f32.mrb[3].mxu1  ;;  %v1033_v27 = vadd.f32 %v884_v54, %v809_v35 }
 0x137   : > { %v1031_v32 = vadd.f32 %v874_v50, %v807_v30  ;;  %v808_v22 = vmul.f32 %v2156_v56, %v491_v31 }
 0x138   : > { %v1034_v28 = vadd.f32 %v889_v53, %v810_v26  ;;  %v1097_v41 = vmul.f32 0.1, %v1033_v27  ;;  %vm1065_vm2 = vcmp.ge.f32.partialorder %v1033_v27, 0.0 }
 0x139   : > { %v1095_v51 = vmul.f32 0.1, %v1031_v32  ;;  %vm1063_vm1 = vcmp.ge.f32.partialorder %v1031_v32, 0.0  ;;  %v1032_v29 = vadd.f32 %v879_v49, %v808_v22 }
 0x13a   : > { %v1098_v50 = vmul.f32 0.1, %v1034_v28  ;;  %vm1066_vm4 = vcmp.ge.f32.partialorder %v1034_v28, 0.0 }
 0x13b   : > { %v1576_v52 = vpop.f32.mrb[4].mxu0  ;;  %v2376_v37 = vpop.f32.mrb[4].mxu1  ;;  %v1127_v53 = vsel %vm1063_vm1, %v1031_v32, %v1095_v51  ;;  %vm1064_vm3 = vcmp.ge.f32.partialorder %v1032_v29, 0.0  ;;  %v1096_v54 = vmul.f32 0.1, %v1032_v29 }
 0x13c   : > { %2603 = vst [vmem:[#allocation34_spill] sm:$0xff] %v2376_v37  ;;  %v504_v55 = vpop.f32.mrb[5].mxu0  ;;  %v2378_v36 = vpop.f32.mrb[5].mxu1  ;;  %v1129_v37 = vsel %vm1065_vm2, %v1033_v27, %v1097_v41  ;;  %v813_v49 = vmul.f32 %v1576_v52, %v2176_v0  ;;  %v1130_v18 = vsel %vm1066_vm4, %v1034_v28, %v1098_v50 }
 0x13d   : > { %2604 = vst [vmem:[#allocation35_spill] sm:$0xff] %v2378_v36  ;;  %v811_v35 = vmul.f32 %v2166_v60, %v504_v55  ;;  %v1577_v56 = vpop.f32.mrb[6].mxu0  ;;  %v2381_v31 = vpop.f32.mrb[6].mxu1  ;;  %v1128_v23 = vsel %vm1064_vm3, %v1032_v29, %v1096_v54  ;;  %v1351_v36 = vmul.f32 %v1194_v42, %v1127_v53 }
 0x13e   : > { %2605 = vst [vmem:[#allocation36_spill] sm:$0xff] %v2381_v31  ;;  %v507_v26 = vpop.f32.mrb[7].mxu0  ;;  %v2383_v30 = vpop.f32.mrb[7].mxu1  ;;  %v1352_v9 = vmul.f32 %v1199_v45, %v1128_v23  ;;  %v1353_v31 = vmul.f32 %v1204_v46, %v1129_v37  ;;  %v1037_v27 = vadd.f32 %v2304_v62, %v813_v49  ;;  %v814_v0 = vmul.f32 %v1577_v56, %v2174_v63 }
 0x13f   : > { %2606 = vst [vmem:[#allocation37_spill] sm:$0xff] %v2383_v30  ;;  %v1035_v22 = vadd.f32 %v2300_v58, %v811_v35  ;;  %v2389_v32 = vpop.permute.xlu1 %1253  ;;  %v2391_v51 = vpop.permute.xlu0 %1258  ;;  %v1354_v23 = vmul.f32 %v1209_v47, %v1130_v18  ;;  %v812_v62 = vmul.f32 %v2164_v59, %v507_v26 }
 0x140   : > { %v1383_v30 = vadd.f32 %v1352_v9, %v1351_v36  ;;  %v1038_v46 = vadd.f32 %v2302_v61, %v814_v0  ;;  %v1101_v63 = vmul.f32 0.1, %v1037_v27  ;;  %vm1069_vm6 = vcmp.ge.f32.partialorder %v1037_v27, 0.0 }
 0x141   : > { %vm1067_vm5 = vcmp.ge.f32.partialorder %v1035_v22, 0.0  ;;  %v1099_v38 = vmul.f32 0.1, %v1035_v22  ;;  %v1036_v47 = vadd.f32 %v2298_v57, %v812_v62 }
 0x142   : > { %v1384_v28 = vadd.f32 %v1383_v30, %v1353_v31  ;;  %v1102_v56 = vmul.f32 0.1, %v1038_v46  ;;  %v1133_v53 = vsel %vm1069_vm6, %v1037_v27, %v1101_v63  ;;  %vm1070_vm8 = vcmp.ge.f32.partialorder %v1038_v46, 0.0 }
 0x143   : > { %v1580_v60 = vpop.f32.mrb[8].mxu0  ;;  %v2387_v55 = vpop.f32.mrb[8].mxu1  ;;  %v1131_v42 = vsel %vm1067_vm5, %v1035_v22, %v1099_v38  ;;  %vm1068_vm7 = vcmp.ge.f32.partialorder %v1036_v47, 0.0 }
 0x144   : > { %v520_v29 = vpop.f32.mrb[9].mxu0  ;;  %v2395_v58 = vpop.f32.mrb[9].mxu1  ;;  %v1355_v41 = vmul.f32 %v2348_v48, %v1131_v42  ;;  %v1385_v9 = vadd.f32 %v1384_v28, %v1354_v23  ;;  %v1100_v48 = vmul.f32 0.1, %v1036_v47  ;;  %v817_v61 = vmul.f32 %v1580_v60, %v2196_v8 }
 0x145   : > { %v1581_v45 = vpop.f32.mrb[10].mxu0  ;;  %v2397_v52 = vpop.f32.mrb[10].mxu1  ;;  %v815_v26 = vmul.f32 %v2186_v4, %v520_v29  ;;  %v1357_v23 = vmul.f32 %v2352_v44, %v1133_v53  ;;  %v1134_v28 = vsel %vm1070_vm8, %v1038_v46, %v1102_v56 }
 0x146   : > { %v523_v50 = vpop.f32.mrb[11].mxu0  ;;  %v2400_v35 = vpop.f32.mrb[11].mxu1  ;;  %v1386_v37 = vadd.f32 %v1385_v9, %v1355_v41  ;;  %v1132_v54 = vsel %vm1068_vm7, %v1036_v47, %v1100_v48  ;;  %v1041_v8 = vadd.f32 %v2312_v6, %v817_v61  ;;  %v818_v4 = vmul.f32 %v1581_v45, %v2194_v7 }
 0x147   : > { %v2407_v36 = vpop.permute.xlu1 %1263  ;;  %v2409_v31 = vpop.permute.xlu0 %1268  ;;  %v1356_v49 = vmul.f32 %v2350_v43, %v1132_v54  ;;  %v1039_v60 = vadd.f32 %v2308_v2, %v815_v26  ;;  %v816_v41 = vmul.f32 %v2184_v3, %v523_v50  ;;  %v1358_v9 = vmul.f32 %v2354_v39, %v1134_v28 }
 0x148   : > { %v1042_v46 = vadd.f32 %v2310_v5, %v818_v4  ;;  %v1105_v63 = vmul.f32 0.1, %v1041_v8  ;;  %vm1073_vm10 = vcmp.ge.f32.partialorder %v1041_v8, 0.0  ;;  %v2609_v4 = vld [vmem:[#allocation18_spill] sm:$0xff] }
 0x149   : > { %v1387_v27 = vadd.f32 %v1386_v37, %v1356_v49  ;;  %vm1071_vm9 = vcmp.ge.f32.partialorder %v1039_v60, 0.0  ;;  %v1103_v44 = vmul.f32 0.1, %v1039_v60  ;;  %v1040_v2 = vadd.f32 %v2306_v1, %v816_v41 }
 0x14a   : > { %v1106_v45 = vmul.f32 0.1, %v1042_v46  ;;  %vm1074_vm11 = vcmp.ge.f32.partialorder %v1042_v46, 0.0  ;;  %v1137_v56 = vsel %vm1073_vm10, %v1041_v8, %v1105_v63  ;;  %v823_v49 = vmul.f32 %v2226_v20, %v2362_v40 }
 0x14b   : > { %v1584_v18 = vpop.f32.mrb[12].mxu0  ;;  %v2405_v38 = vpop.f32.mrb[12].mxu1  ;;  %v1388_v62 = vadd.f32 %v1387_v27, %v1357_v23  ;;  %v1135_v37 = vsel %vm1071_vm9, %v1039_v60, %v1103_v44  ;;  %vm1072_vm12 = vcmp.ge.f32.partialorder %v1040_v2, 0.0  ;;  %v1104_v3 = vmul.f32 0.1, %v1040_v2  ;;  %v2612_v44 = vld [vmem:[#allocation19_spill] sm:$0xff] }
 0x14c   : > { %v536_v59 = vpop.f32.mrb[13].mxu0  ;;  %v2413_v30 = vpop.f32.mrb[13].mxu1  ;;  %v1359_v7 = vmul.f32 %v2356_v33, %v1135_v37  ;;  %v1138_v5 = vsel %vm1074_vm11, %v1042_v46, %v1106_v45  ;;  %v821_v61 = vmul.f32 %v1584_v18, %v2216_v16  ;;  %v1361_v33 = vmul.f32 %v2372_v21, %v1137_v56  ;;  %v2616_v56 = vld [vmem:[#allocation22_spill] sm:$0xff] }
 0x14d   : > { %v1585_v57 = vpop.f32.mrb[14].mxu0  ;;  %v2416_v22 = vpop.f32.mrb[14].mxu1  ;;  %v1389_v6 = vadd.f32 %v1388_v62, %v1358_v9  ;;  %v1136_v48 = vsel %vm1072_vm12, %v1040_v2, %v1104_v3  ;;  %v819_v1 = vmul.f32 %v2206_v12, %v536_v59  ;;  %v1362_v23 = vmul.f32 %v2374_v17, %v1138_v5  ;;  %v2610_v9 = vld [vmem:[#allocation5_spill] sm:$0xff]  ;;  %v2615_v2 = vld [vmem:[#allocation7_spill] sm:$0xff] }
 0x14e   : > { %v539_v0 = vpop.f32.mrb[15].mxu0  ;;  %v2419_v42 = vpop.f32.mrb[15].mxu1  ;;  %v1360_v53 = vmul.f32 %v2358_v34, %v1136_v48  ;;  %v822_v28 = vmul.f32 %v1585_v57, %v2214_v15  ;;  %v1045_v34 = vadd.f32 %v2320_v14, %v821_v61  ;;  %v824_v12 = vmul.f32 %v2224_v19, %v2369_v25  ;;  %v2607_v15 = vld [vmem:[#allocation32_spill] sm:$0xff]  ;;  %v2611_v19 = vld [vmem:[#allocation33_spill] sm:$0xff]  ;;  %v2618_v61 = vld [vmem:[#allocation6_spill] sm:$0xff] }
 0x14f   : > { %v2424_v29 = vpop.permute.xlu1 %1273  ;;  %v2427_v43 = vpop.permute.xlu0 %1278  ;;  %v1390_v39 = vadd.f32 %v1389_v6, %v1359_v7  ;;  %v1043_v26 = vadd.f32 %v2316_v10, %v819_v1  ;;  %v820_v40 = vmul.f32 %v2204_v11, %v539_v0  ;;  %v825_v17 = vmul.f32 %v2607_v15, %v2236_v24  ;;  %v2608_v57 = vld [vmem:[#allocation20_spill] sm:$0xff]  ;;  %v2613_v24 = vld [vmem:[#allocation21_spill] sm:$0xff]  ;;  %v2614_v6 = vld [vmem:[#allocation35_spill] sm:$0xff] }
 0x150   : > { %v1046_v20 = vadd.f32 %v2318_v13, %v822_v28  ;;  %v1047_v14 = vadd.f32 %v2608_v57, %v823_v49  ;;  %v1109_v60 = vmul.f32 0.1, %v1045_v34  ;;  %v826_v25 = vmul.f32 %v2611_v19, %v2610_v9  ;;  %v2619_v28 = vld [vmem:[#allocation9_spill] sm:$0xff]  ;;  %v2624_v57 = vld [vmem:[#allocation24_spill] sm:$0xff] }
 0x151   : > { %v1391_v54 = vadd.f32 %v1390_v39, %v1360_v53  ;;  %vm1075_vm13 = vcmp.ge.f32.partialorder %v1043_v26, 0.0  ;;  %v1107_v16 = vmul.f32 0.1, %v1043_v26  ;;  %v1044_v41 = vadd.f32 %v2609_v4, %v820_v40  ;;  %v2617_v53 = vld [vmem:[#allocation37_spill] sm:$0xff] }
 0x152   : > { %vm1077_vm14 = vcmp.ge.f32.partialorder %v1045_v34, 0.0  ;;  %v1048_v46 = vadd.f32 %v2612_v44, %v824_v12  ;;  %v1110_v11 = vmul.f32 0.1, %v1046_v20  ;;  %v1049_v63 = vadd.f32 %v2613_v24, %v825_v17  ;;  %v2622_v17 = vld [vmem:[#allocation8_spill] sm:$0xff]  ;;  %v2625_v9 = vld [vmem:[#allocation25_spill] sm:$0xff] }
 0x153   : > { %v2433_v50 = vpop.permute.xlu1 %1283  ;;  %v2435_v47 = vpop.permute.xlu0 %1288  ;;  %v1392_v8 = vadd.f32 %v1391_v54, %v1361_v33  ;;  %v1139_v10 = vsel %vm1075_vm13, %v1043_v26, %v1107_v16  ;;  %vm1076_vm15 = vcmp.ge.f32.partialorder %v1044_v41, 0.0  ;;  %v1108_v0 = vmul.f32 0.1, %v1044_v41  ;;  %v2621_v16 = vld [vmem:[#allocation23_spill] sm:$0xff] }
 0x154   : > { %v1363_v59 = vmul.f32 %v2389_v32, %v1139_v10  ;;  %vm1078_vm0 = vcmp.ge.f32.partialorder %v1046_v20, 0.0  ;;  %v1111_v37 = vmul.f32 0.1, %v1047_v14  ;;  %v827_v7 = vmul.f32 %v2615_v2, %v2614_v6 }
 0x155   : > { %v1393_v18 = vadd.f32 %v1392_v8, %v1362_v23  ;;  %v1141_v45 = vsel %vm1077_vm14, %v1045_v34, %v1109_v60  ;;  %v1140_v3 = vsel %vm1076_vm15, %v1044_v41, %v1108_v0  ;;  %vm1079_vm1 = vcmp.ge.f32.partialorder %v1047_v14, 0.0  ;;  %v2620_v8 = vld [vmem:[#allocation34_spill] sm:$0xff] }
 0x156   : > { %v1364_v39 = vmul.f32 %v2391_v51, %v1140_v3  ;;  %v1050_v48 = vadd.f32 %v2616_v56, %v826_v25  ;;  %v1112_v5 = vmul.f32 0.1, %v1048_v46  ;;  %v828_v1 = vmul.f32 %v2618_v61, %v2617_v53  ;;  %v2627_v0 = vld [vmem:[#allocation26_spill] sm:$0xff]  ;;  %v2630_v56 = vld [vmem:[#allocation27_spill] sm:$0xff] }
 0x157   : > { %v2446_v27 = vpop.permute.xlu1 %1293  ;;  %v2451_v21 = vpop.permute.xlu0 %1298  ;;  %v1394_v62 = vadd.f32 %v1393_v18, %v1363_v59  ;;  %v1142_v33 = vsel %vm1078_vm0, %v1046_v20, %v1110_v11  ;;  %vm1080_vm2 = vcmp.ge.f32.partialorder %v1048_v46, 0.0  ;;  %v1365_v54 = vmul.f32 %v2407_v36, %v1141_v45  ;;  %v2623_v36 = vld [vmem:[#allocation36_spill] sm:$0xff] }
 0x158   : > { %v1113_v49 = vmul.f32 0.1, %v1049_v63  ;;  %v1143_v23 = vsel %vm1079_vm1, %v1047_v14, %v1111_v37  ;;  %v829_v34 = vmul.f32 %v2620_v8, %v2619_v28  ;;  %v1051_v12 = vadd.f32 %v2621_v16, %v827_v7  ;;  %v2633_v28 = vld [vmem:[#allocation29_spill] sm:$0xff] }
 0x159   : > { %v1395_v26 = vadd.f32 %v1394_v62, %v1364_v39  ;;  %vm1081_vm3 = vcmp.ge.f32.partialorder %v1049_v63, 0.0  ;;  %v1366_v18 = vmul.f32 %v2409_v31, %v1142_v33  ;;  %v1144_v20 = vsel %vm1080_vm2, %v1048_v46, %v1112_v5  ;;  %v2626_v62 = vld [vmem:[#allocation11_spill] sm:$0xff]  ;;  %v2631_v33 = vld [vmem:[#allocation12_spill] sm:$0xff] }
 0x15a   : > { %v1114_v15 = vmul.f32 0.1, %v1050_v48  ;;  %v830_v59 = vmul.f32 %v2623_v36, %v2622_v17  ;;  %v1052_v14 = vadd.f32 %v2624_v57, %v828_v1  ;;  %v1367_v60 = vmul.f32 %v2424_v29, %v1143_v23  ;;  %v2628_v29 = vld [vmem:[#allocation10_spill] sm:$0xff] }
 0x15b   : > { %v2463_v13 = vpop.permute.xlu1 %1303  ;;  %v2466_v32 = vpop.permute.xlu0 %1308  ;;  %v1396_v40 = vadd.f32 %v1395_v26, %v1365_v54  ;;  %vm1082_vm4 = vcmp.ge.f32.partialorder %v1050_v48, 0.0  ;;  %v1145_v41 = vsel %vm1081_vm3, %v1049_v63, %v1113_v49  ;;  %v1053_v19 = vadd.f32 %v2625_v9, %v829_v34 }
 0x15c   : > { %v1115_v25 = vmul.f32 0.1, %v1051_v12  ;;  %v831_v44 = vmul.f32 %v2626_v62, %v2395_v58  ;;  %v1368_v31 = vmul.f32 %v2427_v43, %v1144_v20  ;;  %vm1083_vm5 = vcmp.ge.f32.partialorder %v1051_v12, 0.0  ;;  %v2629_v58 = vld [vmem:[#allocation13_spill] sm:$0xff]  ;;  %v2635_v20 = vld [vmem:[#allocation30_spill] sm:$0xff] }
 0x15d   : > { %v1397_v4 = vadd.f32 %v1396_v40, %v1366_v18  ;;  %v1146_v11 = vsel %vm1082_vm4, %v1050_v48, %v1114_v15  ;;  %v1054_v24 = vadd.f32 %v2627_v0, %v830_v59  ;;  %v1116_v37 = vmul.f32 0.1, %v1052_v14 }
 0x15e   : > { %v832_v2 = vmul.f32 %v2628_v29, %v2400_v35  ;;  %v1369_v63 = vmul.f32 %v2433_v50, %v1145_v41  ;;  %vm1084_vm6 = vcmp.ge.f32.partialorder %v1052_v14, 0.0  ;;  %v1117_v3 = vmul.f32 0.1, %v1053_v19  ;;  %v2632_v50 = vld [vmem:[#allocation28_spill] sm:$0xff] }
 0x15f   : > { %v2478_v10 = vpop.permute.xlu1 %1313  ;;  %v2480_v51 = vpop.permute.xlu0 %1318  ;;  %v1398_v46 = vadd.f32 %v1397_v4, %v1367_v60  ;;  %v1147_v39 = vsel %vm1083_vm5, %v1051_v12, %v1115_v25  ;;  %v833_v43 = vmul.f32 %v2387_v55, %v2629_v58  ;;  %v1055_v5 = vadd.f32 %v2630_v56, %v831_v44  ;;  %v2637_v4 = vld [vmem:[#allocation17_spill] sm:$0xff] }
 0x160   : > { %v1370_v48 = vmul.f32 %v2435_v47, %v1146_v11  ;;  %vm1085_vm7 = vcmp.ge.f32.partialorder %v1053_v19, 0.0  ;;  %v1148_v61 = vsel %vm1084_vm6, %v1052_v14, %v1116_v37  ;;  %v1118_v1 = vmul.f32 0.1, %v1054_v24  ;;  %v2634_v47 = vld [vmem:[#allocation15_spill] sm:$0xff] }
 0x161   : > { %v1399_v45 = vadd.f32 %v1398_v46, %v1368_v31  ;;  %v834_v35 = vmul.f32 %v2397_v52, %v2631_v33  ;;  %v1056_v54 = vadd.f32 %v2632_v50, %v832_v2  ;;  %v1371_v26 = vmul.f32 %v2446_v27, %v1147_v39  ;;  %v2636_v27 = vld [vmem:[#allocation14_spill] sm:$0xff]  ;;  %v2639_v31 = vld [vmem:[#allocation16_spill] sm:$0xff] }
 0x162   : > { %vm1086_vm8 = vcmp.ge.f32.partialorder %v1054_v24, 0.0  ;;  %v1149_v23 = vsel %vm1085_vm7, %v1053_v19, %v1117_v3  ;;  %v1057_v55 = vadd.f32 %v2633_v28, %v833_v43  ;;  %v1119_v8 = vmul.f32 0.1, %v1055_v5 }
 0x163   : > { %v1324_v6 = vpop.permute.xlu1 %1323  ;;  %v1019_v7 = vpop.permute.xlu0 %1018  ;;  %v1400_v53 = vadd.f32 %v1399_v45, %v1369_v63  ;;  %v835_v16 = vmul.f32 %v2634_v47, %v2413_v30  ;;  %v1372_v12 = vmul.f32 %v2451_v21, %v1148_v61  ;;  %vm1087_vm9 = vcmp.ge.f32.partialorder %v1055_v5, 0.0  ;;  %v2638_v21 = vld [vmem:[#allocation31_spill] sm:$0xff] }
 0x164   : > { %v1150_v52 = vsel %vm1086_vm8, %v1054_v24, %v1118_v1  ;;  %v1058_v15 = vadd.f32 %v2635_v20, %v834_v35  ;;  %v1120_v17 = vmul.f32 0.1, %v1056_v54  ;;  %v836_v36 = vmul.f32 %v2636_v27, %v2419_v42 }
 0x165   : > { %v1401_v49 = vadd.f32 %v1400_v53, %v1370_v48  ;;  %v1373_v59 = vmul.f32 %v2463_v13, %v1149_v23  ;;  %vm1088_vm10 = vcmp.ge.f32.partialorder %v1056_v54, 0.0  ;;  %v1121_v14 = vmul.f32 0.1, %v1057_v55 }
 0x166   : > { %v1151_v60 = vsel %vm1087_vm9, %v1055_v5, %v1119_v8  ;;  %v837_v30 = vmul.f32 %v2405_v38, %v2637_v4  ;;  %v1059_v41 = vadd.f32 %v2638_v21, %v835_v16  ;;  %v1374_v9 = vmul.f32 %v2466_v32, %v1150_v52 }
 0x167   : > { %v1329_v34 = vpop.permute.xlu1 %1328  ;;  %v1024_v18 = vpop.permute.xlu0 %1023  ;;  %v1402_v40 = vadd.f32 %v1401_v49, %v1371_v26  ;;  %vm1089_vm11 = vcmp.ge.f32.partialorder %v1057_v55, 0.0  ;;  %v1152_v25 = vsel %vm1088_vm10, %v1056_v54, %v1120_v17  ;;  %v1122_v62 = vmul.f32 0.1, %v1058_v15 }
 0x168   : > { %v838_v42 = vmul.f32 %v2416_v22, %v2639_v31  ;;  %v1060_v13 = vadd.f32 %v1019_v7, %v836_v36  ;;  %v1375_v46 = vmul.f32 %v2478_v10, %v1151_v60  ;;  %vm1090_vm12 = vcmp.ge.f32.partialorder %v1058_v15, 0.0 }
 0x169   : > { %v1403_v57 = vadd.f32 %v1402_v40, %v1372_v12  ;;  %v1153_v24 = vsel %vm1089_vm11, %v1057_v55, %v1121_v14  ;;  %v1061_v38 = vadd.f32 %v1024_v18, %v837_v30  ;;  %v1123_v37 = vmul.f32 0.1, %v1059_v41 }
 0x16a   : > { %v1376_v29 = vmul.f32 %v2480_v51, %v1152_v25  ;;  %vm1091_vm13 = vcmp.ge.f32.partialorder %v1059_v41, 0.0  ;;  %v1154_v2 = vsel %vm1090_vm12, %v1058_v15, %v1122_v62  ;;  %v1124_v63 = vmul.f32 0.1, %v1060_v13 }
 0x16b   : > { %v1404_v19 = vadd.f32 %v1403_v57, %v1373_v59  ;;  %v1334_v44 = vpop.permute.xlu1 %1333  ;;  %v1029_v0 = vpop.permute.xlu0 %1028  ;;  %v1377_v3 = vmul.f32 %v1324_v6, %v1153_v24  ;;  %vm1092_vm14 = vcmp.ge.f32.partialorder %v1060_v13, 0.0  ;;  %v1155_v22 = vsel %vm1091_vm13, %v1059_v41, %v1123_v37 }
 0x16c   : > { %v1062_v45 = vadd.f32 %v1029_v0, %v838_v42  ;;  %v1125_v58 = vmul.f32 0.1, %v1061_v38  ;;  %v1378_v10 = vmul.f32 %v1329_v34, %v1154_v2  ;;  %vm1093_vm15 = vcmp.ge.f32.partialorder %v1061_v38, 0.0 }
 0x16d   : > { %v1405_v11 = vadd.f32 %v1404_v19, %v1374_v9  ;;  %v1156_v56 = vsel %vm1092_vm14, %v1060_v13, %v1124_v63  ;;  %v1379_v48 = vmul.f32 %v1334_v44, %v1155_v22 }
 0x16e   : > { %v1126_v5 = vmul.f32 0.1, %v1062_v45  ;;  %vm1094_vm0 = vcmp.ge.f32.partialorder %v1062_v45, 0.0  ;;  %v1157_v61 = vsel %vm1093_vm15, %v1061_v38, %v1125_v58 }
 0x16f   : > { %v1406_v32 = vadd.f32 %v1405_v11, %v1375_v46  ;;  %v1339_v7 = vpop.permute.xlu1 %1338  ;;  %v1344_v51 = vpop.permute.xlu0 %1343 }
 0x170   : > { %v1380_v1 = vmul.f32 %v1339_v7, %v1156_v56  ;;  %v1158_v6 = vsel %vm1094_vm0, %v1062_v45, %v1126_v5  ;;  %v1381_v54 = vmul.f32 %v1344_v51, %v1157_v61 }
 0x171   : > { %v1407_v39 = vadd.f32 %v1406_v32, %v1376_v29 }
 0x173   : > { %v1408_v43 = vadd.f32 %v1407_v39, %v1377_v3  ;;  %v1349_v35 = vpop.permute.xlu1 %1348 }
 0x174   : > { %v1382_v26 = vmul.f32 %v1349_v35, %v1158_v6 }
 0x175   : > { %v1409_v53 = vadd.f32 %v1408_v43, %v1378_v10 }
 0x177   : > { %v1410_v33 = vadd.f32 %v1409_v53, %v1379_v48 }
 0x179   : > { %v1411_v50 = vadd.f32 %v1410_v33, %v1380_v1 }
 0x17b   : > { %v1412_v49 = vadd.f32 %v1411_v50, %v1381_v54 }
 0x17d   : > { %v1413_v23 = vadd.f32 %v1412_v49, %v1382_v26 }
 0x17f   : > { %v1414_v28 = vrot.slane %v1413_v23, 4 }
 0x181   : > { %v1415_v55 = vadd.f32 %v1414_v28, %v1413_v23 }
 0x183   : > { %v1416_v8 = vrot.slane %v1415_v55, 2 }
 0x185   : > { %v1417_v34 = vadd.f32 %v1416_v8, %v1415_v55 }
 0x187   : > { %v1418_v47 = vrot.slane %v1417_v34, 1 }
 0x189   : > { %v1419_v16 = vadd.f32 %v1418_v47, %v1417_v34 }
 0x18b   : > { %1420 = vst [vmem:[%s229_s15] sm:$0x1] %v1419_v16 }
 0x18c   : > { %1705 = shalt.err (!%p1702_p3)
}
 0x18d   : > { %s1706_s9 = scalar_lea.hbm %s2524_s22, 16  ;;  %s1710_s11 = scalar_lea.hbm %s2571_s5, 48 }
 0x18e   : > { %p1707_p4 = scmp.ne.s32.totalorder %s2524_s22, %s1706_s9  ;;  %p1711_p9 = scmp.lt.u32.totalorder %s2524_s22, %s2571_s5 }
 0x18f   : > { %p1712_p10 = scmp.lt.u32.totalorder %s1710_s11, %s1706_s9  ;;  %p1714_p12 = scmp.lt.u32.totalorder %s1706_s9, %s2524_s22 }
 0x190   : > { %p1708_p7 = pnand %p1707_p4, %p1823_p5 }
 0x191   : > { %p1713_p11 = por %p1712_p10, %p1711_p9 }
 0x192   : > { %p1709_p8 = pneg %p1708_p7 }
 0x193   : > { %p1715_p13 = por %p1714_p12, %p1713_p11 }
 0x195   : > { %p1716_p0 = pnand %p1715_p13, %p1709_p8 }
 0x197   : > { %1719 = shalt.err (!%p1716_p0)
}
 0x198   : > { %1634 = dma.vmem_to_hbm [thread:$0]  (%p1823_p5), %s2526_s16, 16, %s2524_s22, %s1422_s23  }
 0x199 PF: > { %p1640_p1 = scmp.ge.s32.totalorder %s1754_s21, 2  ;;  %s1446_s14 = sand.u32 1, %s1742_s18  }
 0x19a   : > { %s1447_s15 = scalar_lea.sflag [#allocation3], %s1446_s14 }
 0x19b   : > { %p1637_p2 = pnand %p1640_p1, %p1827_p6 }
 0x19d   : > { %1737 = dma.done.wait (!%p1637_p2), %s1447_s15, 16  }
 0x19e   : > { %1739 = vsyncadd (!%p1637_p2), %s1447_s15, 4294967280  ;;  %p15_p3 = scmp.ge.s32.totalorder %s1811_s24, 5   ;;  %s2640_s18 = smov %s1746_s19 }
 0x19f   : > { %s2641_s19 = smov %s1750_s20  ;;  %s2642_s20 = smov %s1821_s27 }
 0x1a0   : > { %s2643_s21 = smov %s1811_s24  ;;  %17 = sbr.rel (!%p15_p3) target bundleno = 3 (0x3), region = 75 }
 0x1a7   :  { %1451 = vsyncpa [#allocation3], 1 }
 0x1a8   :  { %1453 = vsyncpa [#allocation3 + $0x1], 1 }

</bundles_post_ra>
